<compile_context>
chip_gen: v7x
topology: tpu7x:2x2x1
jax: 0.10.0
libtpu: 0.0.40
codegen_flags: <defaults>
</compile_context>

<pallas_src>
import numpy as np
import jax
import jax.numpy as jnp
from jax import lax
from jax.experimental import pallas as pl
from jax.experimental.pallas import tpu as pltpu


def _bilinear_matrix(out_size: int, in_size: int) -> np.ndarray:
    """Dense operator (out_size, in_size) implementing PyTorch F.interpolate bilinear
    (align_corners=False, no antialias) along one axis."""
    scale = in_size / out_size
    m = np.zeros((out_size, in_size), dtype=np.float64)
    for i in range(out_size):
        src = (i + 0.5) * scale - 0.5
        if src < 0.0:
            src = 0.0
        i0 = min(int(np.floor(src)), in_size - 1)
        i1 = min(i0 + 1, in_size - 1)
        l1 = src - i0
        m[i, i0] += 1.0 - l1
        m[i, i1] += l1
    return m


def _block_expand_matrix(size: int, n_blocks: int, block_size: int) -> np.ndarray:
    """0/1 matrix (size, n_blocks): row i selects block i // block_size."""
    m = np.zeros((size, n_blocks), dtype=np.float32)
    idx = np.minimum(np.arange(size) // block_size, n_blocks - 1)
    m[np.arange(size), idx] = 1.0
    return m


def _vmem_limit_bytes() -> int:
    """Generation-aware VMEM limit: ~3/4 of physical VMEM (48 MiB v7x, 96 MiB v5e/v6e)."""
    cap = 64 * 1024 * 1024
    try:
        cap = int(pltpu.get_tpu_info().vmem_capacity_bytes)
    except Exception:
        pass
    return int(min(cap * 3 // 4, 100 * 1024 * 1024))


def _make_kernel(C: int, H: int, W: int, apply_noise: bool):
    def kernel(*refs):
        if apply_noise:
            nb_ref, eh_ref, ewt_ref, mh_ref, mwt_ref, x_ref, o_ref, y1_ref = refs
        else:
            mh_ref, mwt_ref, x_ref, o_ref, y1_ref = refs

        mh = mh_ref[...]                                      # (H, H) bf16 row operator
        mwt = mwt_ref[...]                                    # (W, W) bf16 column operator^T

        # ---- W-pass: ONE channel-batched MXU matmul, (C*H, W) @ (W, W). ----
        x = x_ref[0].astype(jnp.bfloat16)                     # (C, H, W)
        y1 = jnp.dot(x.reshape(C * H, W), mwt,
                     preferred_element_type=jnp.float32)      # (C*H, W), f32 accumulate
        y1_ref[...] = y1.astype(jnp.bfloat16).reshape(C, H, W)

        # ---- Expand 8x8 block noise to (H, W) with two tiny MXU matmuls. ----
        if apply_noise:
            nb = nb_ref[0].astype(jnp.bfloat16)               # (nh, nw)
            rows = jnp.dot(eh_ref[...], nb,
                           preferred_element_type=jnp.float32)            # (H, nw)
            noise = jnp.dot(rows.astype(jnp.bfloat16), ewt_ref[...],
                            preferred_element_type=jnp.float32)           # (H, W)

        # ---- H-pass: per-channel matmuls via fori_loop (bounds live ranges). ----
        def body(c, carry):
            yc = jnp.dot(mh, y1_ref[c], preferred_element_type=jnp.float32)  # (H, W)
            if apply_noise:
                # torch clamps only on the noise path; noise shared across channels.
                yc = jnp.clip(yc + noise, -1.0, 1.0)
            o_ref[0, c] = yc.astype(o_ref.dtype)
            return carry

        lax.fori_loop(0, C, body, 0)

    return kernel


def compress_image(x, *, scale_factor=0.5, noise_blocks=None, block_size=8):
    """JAX/Pallas equivalent of CompressImageGPU.forward with trace-time randomness.

    x            : (B, C, H, W) float array
    scale_factor : the value random.choice(self.scale_factors) would have returned
    noise_blocks : (B, ceil(H/8), ceil(W/8)) per-block noise values, or None (no noise)
    """
    B, C, H, W = x.shape
    new_h = max(int(H * scale_factor), 1)
    new_w = max(int(W * scale_factor), 1)

    # Compose downsample + upsample into single per-axis operators (exact: linear maps).
    mh = jnp.asarray(_bilinear_matrix(H, new_h) @ _bilinear_matrix(new_h, H),
                     dtype=jnp.bfloat16)                      # (H, H)
    mwt = jnp.asarray((_bilinear_matrix(W, new_w) @ _bilinear_matrix(new_w, W)).T,
                      dtype=jnp.bfloat16)                     # (W, W)

    apply_noise = noise_blocks is not None
    kernel = _make_kernel(C, H, W, apply_noise)

    flops = int(2 * B * C * (H * H * W + H * W * W))
    bytes_accessed = int(2 * B * C * H * W * x.dtype.itemsize + (H * H + W * W) * 2)

    def run(single_buffer_residents: bool):
        def resident(shape):
            index_map = lambda b, _n=len(shape): (0,) * _n
            if single_buffer_residents and hasattr(pl, "Buffered"):
                try:
                    return pl.BlockSpec(shape, index_map, pipeline_mode=pl.Buffered(1))
                except TypeError:
                    pass
            return pl.BlockSpec(shape, index_map)

        in_specs = []
        operands = []
        if apply_noise:
            nh, nw = int(noise_blocks.shape[1]), int(noise_blocks.shape[2])
            eh = jnp.asarray(_block_expand_matrix(H, nh, block_size),
                             dtype=jnp.bfloat16)              # (H, nh)
            ewt = jnp.asarray(_block_expand_matrix(W, nw, block_size).T,
                              dtype=jnp.bfloat16)             # (nw, W)
            in_specs += [
                pl.BlockSpec((1, nh, nw), lambda b: (b, 0, 0)),   # block noise (tiny)
                resident((H, nh)),                                # Eh  (resident)
                resident((nw, W)),                                # Ew^T (resident)
            ]
            operands += [noise_blocks.astype(jnp.float32), eh, ewt]

        in_specs += [
            resident((H, H)),                                     # Mh  (resident)
            resident((W, W)),                                     # Mw^T (resident)
            pl.BlockSpec((1, C, H, W), lambda b: (b, 0, 0, 0)),   # input planes
        ]
        operands += [mh, mwt, x]

        return pl.pallas_call(
            kernel,
            out_shape=jax.ShapeDtypeStruct((B, C, H, W), x.dtype),
            grid=(B,),
            in_specs=in_specs,
            out_specs=pl.BlockSpec((1, C, H, W), lambda b: (b, 0, 0, 0)),
            scratch_shapes=[pltpu.VMEM((C, H, W), jnp.bfloat16)],   # W-pass result
            compiler_params=pltpu.CompilerParams(
                dimension_semantics=("parallel",),
                vmem_limit_bytes=_vmem_limit_bytes()),
            cost_estimate=pl.CostEstimate(
                flops=flops, transcendentals=0, bytes_accessed=bytes_accessed),
        )(*operands)

    try:
        return run(True)
    except Exception:
        # Fallback for jax versions where pipeline_mode=pl.Buffered(1) is not supported.
        return run(False)


def _resize_bilinear_np(x, out_h, out_w):
    """Pure-numpy PyTorch-style bilinear resize (align_corners=False), float64."""
    B, C, H, W = x.shape

    def coords(out_size, in_size):
        scale = in_size / out_size
        src = np.maximum((np.arange(out_size) + 0.5) * scale - 0.5, 0.0)
        i0 = np.minimum(np.floor(src).astype(np.int64), in_size - 1)
        i1 = np.minimum(i0 + 1, in_size - 1)
        l1 = src - i0
        return i0, i1, 1.0 - l1, l1

    h0, h1, a0, a1 = coords(out_h, H)
    w0, w1, b0, b1 = coords(out_w, W)
    xv = (x[:, :, h0, :] * a0[None, None, :, None]
          + x[:, :, h1, :] * a1[None, None, :, None])
    return xv[:, :, :, w0] * b0 + xv[:, :, :, w1] * b1


if __name__ == "__main__":
    key = jax.random.PRNGKey(0)
    kx, kn = jax.random.split(key)
    B, C, H, W = 2, 4, 16, 16
    x = jax.random.uniform(kx, (B, C, H, W), dtype=jnp.float32, minval=-1.0, maxval=1.0)

    block_size = 8
    nh, nw = -(-H // block_size), -(-W // block_size)
    noise_blocks = (jax.random.uniform(kn, (B, nh, nw), dtype=jnp.float32) - 0.5) / 50.0

    x64 = np.asarray(x, dtype=np.float64)

    # --- Branch 1: noise applied (random.random() < prob), scale_factor = 0.5 ---
    out = jax.block_until_ready(
        compress_image(x, scale_factor=0.5, noise_blocks=noise_blocks,
                       block_size=block_size))
    ds = _resize_bilinear_np(x64, int(H * 0.5), int(W * 0.5))
    rec = _resize_bilinear_np(ds, H, W)
    nf = np.repeat(np.repeat(np.asarray(noise_blocks, np.float64), block_size, axis=1),
                   block_size, axis=2)[:, :H, :W]
    ref = np.clip(rec + nf[:, None, :, :], -1.0, 1.0)
    # Tolerance covers bf16 MXU operands (f32 accumulation).
    np.testing.assert_allclose(np.asarray(out), ref, rtol=2e-2, atol=2e-2)

    # --- Branch 2: no noise, scale_factor = 0.75 ---
    out2 = jax.block_until_ready(compress_image(x, scale_factor=0.75, noise_blocks=None))
    ds2 = _resize_bilinear_np(x64, int(H * 0.75), int(W * 0.75))
    ref2 = _resize_bilinear_np(ds2, H, W)
    np.testing.assert_allclose(np.asarray(out2), ref2, rtol=2e-2, atol=2e-2)

    print("KERNEL_OK")
</pallas_src>

<mosaic_0001>
module attributes {stable_mosaic.version = 11 : i64} {
  func.func @kernel(%arg0: i32, %arg1: memref<1x2x2xf32, #tpu.memory_space<vmem>>, %arg2: memref<16x2xbf16, #tpu.memory_space<vmem>>, %arg3: memref<2x16xbf16, #tpu.memory_space<vmem>>, %arg4: memref<16x16xbf16, #tpu.memory_space<vmem>>, %arg5: memref<16x16xbf16, #tpu.memory_space<vmem>>, %arg6: memref<1x4x16x16xf32, #tpu.memory_space<vmem>>, %arg7: memref<1x4x16x16xf32, #tpu.memory_space<vmem>>, %arg8: memref<4x16x16xbf16, #tpu.memory_space<vmem>>) attributes {dimension_semantics = [#tpu.dimension_semantics<parallel>], iteration_bounds = array<i64: 2>, scalar_prefetch = 0 : i64, scratch_operands = 1 : i64, tpu.core_type = #tpu.core_type<tc>, window_params = [{transform_indices = @transform_0, window_bounds = array<i64: 1, 2, 2>}, {pipeline_mode = #tpu.pipeline_mode<synchronous>, transform_indices = @transform_1, window_bounds = array<i64: 16, 2>}, {pipeline_mode = #tpu.pipeline_mode<synchronous>, transform_indices = @transform_2, window_bounds = array<i64: 2, 16>}, {pipeline_mode = #tpu.pipeline_mode<synchronous>, transform_indices = @transform_3, window_bounds = array<i64: 16, 16>}, {pipeline_mode = #tpu.pipeline_mode<synchronous>, transform_indices = @transform_4, window_bounds = array<i64: 16, 16>}, {transform_indices = @transform_5, window_bounds = array<i64: 1, 4, 16, 16>}, {transform_indices = @transform_6, window_bounds = array<i64: 1, 4, 16, 16>}]} {
    %c0 = arith.constant 0 : index
    %c0_0 = arith.constant 0 : index
    %0 = vector.load %arg4[%c0, %c0_0] : memref<16x16xbf16, #tpu.memory_space<vmem>>, vector<16x16xbf16>
    %c0_1 = arith.constant 0 : index
    %c0_2 = arith.constant 0 : index
    %1 = vector.load %arg5[%c0_1, %c0_2] : memref<16x16xbf16, #tpu.memory_space<vmem>>, vector<16x16xbf16>
    %c0_3 = arith.constant 0 : index
    %c0_4 = arith.constant 0 : index
    %c0_5 = arith.constant 0 : index
    %c0_6 = arith.constant 0 : index
    %2 = vector.load %arg6[%c0_3, %c0_4, %c0_5, %c0_6] : memref<1x4x16x16xf32, #tpu.memory_space<vmem>>, vector<1x4x16x16xf32>
    %3 = vector.shape_cast %2 : vector<1x4x16x16xf32> to vector<4x16x16xf32>
    %4 = arith.truncf %3 : vector<4x16x16xf32> to vector<4x16x16xbf16>
    %5 = vector.shape_cast %4 : vector<4x16x16xbf16> to vector<64x16xbf16>
    %cst = arith.constant dense<0.000000e+00> : vector<64x16xf32>
    %6 = tpu.matmul %5, %1, %cst {dimension_numbers = #tpu.dot_dimension_numbers<[1], [0], [0], [1], [0, 0, 1, 1], [], []>} : vector<64x16xbf16>, vector<16x16xbf16>, vector<64x16xf32> -> vector<64x16xf32>
    %7 = arith.truncf %6 : vector<64x16xf32> to vector<64x16xbf16>
    %8 = vector.shape_cast %7 : vector<64x16xbf16> to vector<4x16x16xbf16>
    %c0_7 = arith.constant 0 : index
    %c0_8 = arith.constant 0 : index
    %c0_9 = arith.constant 0 : index
    %9 = vector.load %arg8[%c0_7, %c0_8, %c0_9] : memref<4x16x16xbf16, #tpu.memory_space<vmem>>, vector<4x16x16xbf16>
    tpu.vector_store %arg8[%c0_7, %c0_8, %c0_9], %8 {strides = array<i32>} : memref<4x16x16xbf16, #tpu.memory_space<vmem>>, vector<4x16x16xbf16>,
    %c0_10 = arith.constant 0 : index
    %c0_11 = arith.constant 0 : index
    %c0_12 = arith.constant 0 : index
    %10 = vector.load %arg1[%c0_10, %c0_11, %c0_12] : memref<1x2x2xf32, #tpu.memory_space<vmem>>, vector<1x2x2xf32>
    %11 = vector.shape_cast %10 : vector<1x2x2xf32> to vector<2x2xf32>
    %12 = arith.truncf %11 : vector<2x2xf32> to vector<2x2xbf16>
    %c0_13 = arith.constant 0 : index
    %c0_14 = arith.constant 0 : index
    %13 = vector.load %arg2[%c0_13, %c0_14] : memref<16x2xbf16, #tpu.memory_space<vmem>>, vector<16x2xbf16>
    %cst_15 = arith.constant dense<0.000000e+00> : vector<16x2xf32>
    %14 = tpu.matmul %13, %12, %cst_15 {dimension_numbers = #tpu.dot_dimension_numbers<[1], [0], [0], [1], [0, 0, 1, 1], [], []>} : vector<16x2xbf16>, vector<2x2xbf16>, vector<16x2xf32> -> vector<16x2xf32>
    %15 = arith.truncf %14 : vector<16x2xf32> to vector<16x2xbf16>
    %c0_16 = arith.constant 0 : index
    %c0_17 = arith.constant 0 : index
    %16 = vector.load %arg3[%c0_16, %c0_17] : memref<2x16xbf16, #tpu.memory_space<vmem>>, vector<2x16xbf16>
    %cst_18 = arith.constant dense<0.000000e+00> : vector<16x16xf32>
    %17 = tpu.matmul %15, %16, %cst_18 {dimension_numbers = #tpu.dot_dimension_numbers<[1], [0], [0], [1], [0, 0, 1, 1], [], []>} : vector<16x2xbf16>, vector<2x16xbf16>, vector<16x16xf32> -> vector<16x16xf32>
    %c0_i32 = arith.constant 0 : i32
    %c4_i32 = arith.constant 4 : i32
    %18 = arith.addi %c0_i32, %c4_i32 : i32
    %c1_i32 = arith.constant 1 : i32
    scf.for %arg9 = %c0_i32 to %18 step %c1_i32  : i32 {
      %19 = arith.index_cast %arg9 : i32 to index
      %c0_20 = arith.constant 0 : index
      %c0_21 = arith.constant 0 : index
      %20 = vector.load %arg8[%19, %c0_20, %c0_21] : memref<4x16x16xbf16, #tpu.memory_space<vmem>>, vector<1x16x16xbf16>
      %21 = vector.shape_cast %20 : vector<1x16x16xbf16> to vector<16x16xbf16>
      %cst_22 = arith.constant dense<0.000000e+00> : vector<16x16xf32>
      %22 = tpu.matmul %0, %21, %cst_22 {dimension_numbers = #tpu.dot_dimension_numbers<[1], [0], [0], [1], [0, 0, 1, 1], [], []>} : vector<16x16xbf16>, vector<16x16xbf16>, vector<16x16xf32> -> vector<16x16xf32>
      %23 = arith.addf %22, %17 : vector<16x16xf32>
      %cst_23 = arith.constant -1.000000e+00 : f32
      %cst_24 = arith.constant 1.000000e+00 : f32
      %24 = vector.broadcast %cst_23 : f32 to vector<16x16xf32>
      %25 = arith.maximumf %24, %23 : vector<16x16xf32>
      %26 = vector.broadcast %cst_24 : f32 to vector<16x16xf32>
      %27 = arith.minimumf %26, %25 : vector<16x16xf32>
      %c0_25 = arith.constant 0 : index
      %28 = arith.index_cast %arg9 : i32 to index
      %c0_26 = arith.constant 0 : index
      %c0_27 = arith.constant 0 : index
      %29 = vector.load %arg7[%c0_25, %28, %c0_26, %c0_27] : memref<1x4x16x16xf32, #tpu.memory_space<vmem>>, vector<1x1x16x16xf32>
      %30 = vector.shape_cast %29 : vector<1x1x16x16xf32> to vector<16x16xf32>
      %31 = vector.shape_cast %27 : vector<16x16xf32> to vector<1x1x16x16xf32>
      tpu.vector_store %arg7[%c0_25, %28, %c0_26, %c0_27], %31 {strides = array<i32>} : memref<1x4x16x16xf32, #tpu.memory_space<vmem>>, vector<1x1x16x16xf32>,
    }
    %c4_i32_19 = arith.constant 4 : i32
    return
  }
  func.func @transform_0(%arg0: i32) -> (i32, i32, i32) {
    %c0_i32 = arith.constant 0 : i32
    %c0_i32_0 = arith.constant 0 : i32
    %c0_i32_1 = arith.constant 0 : i32
    return %arg0, %c0_i32, %c0_i32_0 : i32, i32, i32
  }
  func.func @transform_1(%arg0: i32) -> (i32, i32) {
    %c0_i32 = arith.constant 0 : i32
    %c0_i32_0 = arith.constant 0 : i32
    %c0_i32_1 = arith.constant 0 : i32
    return %c0_i32, %c0_i32_0 : i32, i32
  }
  func.func @transform_2(%arg0: i32) -> (i32, i32) {
    %c0_i32 = arith.constant 0 : i32
    %c0_i32_0 = arith.constant 0 : i32
    %c0_i32_1 = arith.constant 0 : i32
    return %c0_i32, %c0_i32_0 : i32, i32
  }
  func.func @transform_3(%arg0: i32) -> (i32, i32) {
    %c0_i32 = arith.constant 0 : i32
    %c0_i32_0 = arith.constant 0 : i32
    %c0_i32_1 = arith.constant 0 : i32
    return %c0_i32, %c0_i32_0 : i32, i32
  }
  func.func @transform_4(%arg0: i32) -> (i32, i32) {
    %c0_i32 = arith.constant 0 : i32
    %c0_i32_0 = arith.constant 0 : i32
    %c0_i32_1 = arith.constant 0 : i32
    return %c0_i32, %c0_i32_0 : i32, i32
  }
  func.func @transform_5(%arg0: i32) -> (i32, i32, i32, i32) {
    %c0_i32 = arith.constant 0 : i32
    %c0_i32_0 = arith.constant 0 : i32
    %c0_i32_1 = arith.constant 0 : i32
    %c0_i32_2 = arith.constant 0 : i32
    return %arg0, %c0_i32, %c0_i32_0, %c0_i32_1 : i32, i32, i32, i32
  }
  func.func @transform_6(%arg0: i32) -> (i32, i32, i32, i32) {
    %c0_i32 = arith.constant 0 : i32
    %c0_i32_0 = arith.constant 0 : i32
    %c0_i32_1 = arith.constant 0 : i32
    %c0_i32_2 = arith.constant 0 : i32
    return %arg0, %c0_i32, %c0_i32_0, %c0_i32_1 : i32, i32, i32, i32
  }
}

module attributes {stable_mosaic.version = 11 : i64} {
  func.func @kernel(%arg0: i32, %arg1: memref<1x2x2xf32, #tpu.memory_space<vmem>>, %arg2: memref<16x2xbf16, #tpu.memory_space<vmem>>, %arg3: memref<2x16xbf16, #tpu.memory_space<vmem>>, %arg4: memref<16x16xbf16, #tpu.memory_space<vmem>>, %arg5: memref<16x16xbf16, #tpu.memory_space<vmem>>, %arg6: memref<1x4x16x16xf32, #tpu.memory_space<vmem>>, %arg7: memref<1x4x16x16xf32, #tpu.memory_space<vmem>>, %arg8: memref<4x16x16xbf16, #tpu.memory_space<vmem>>) attributes {dimension_semantics = [#tpu.dimension_semantics<parallel>], iteration_bounds = array<i64: 2>, scalar_prefetch = 0 : i64, scratch_operands = 1 : i64, tpu.core_type = #tpu.core_type<tc>, window_params = [{transform_indices = @transform_0, window_bounds = array<i64: 1, 2, 2>}, {pipeline_mode = #tpu.pipeline_mode<synchronous>, transform_indices = @transform_1, window_bounds = array<i64: 16, 2>}, {pipeline_mode = #tpu.pipeline_mode<synchronous>, transform_indices = @transform_2, window_bounds = array<i64: 2, 16>}, {pipeline_mode = #tpu.pipeline_mode<synchronous>, transform_indices = @transform_3, window_bounds = array<i64: 16, 16>}, {pipeline_mode = #tpu.pipeline_mode<synchronous>, transform_indices = @transform_4, window_bounds = array<i64: 16, 16>}, {transform_indices = @transform_5, window_bounds = array<i64: 1, 4, 16, 16>}, {transform_indices = @transform_6, window_bounds = array<i64: 1, 4, 16, 16>}]} {
    %c0 = arith.constant 0 : index
    %c0_0 = arith.constant 0 : index
    %0 = vector.load %arg4[%c0, %c0_0] : memref<16x16xbf16, #tpu.memory_space<vmem>>, vector<16x16xbf16>
    %c0_1 = arith.constant 0 : index
    %c0_2 = arith.constant 0 : index
    %1 = vector.load %arg5[%c0_1, %c0_2] : memref<16x16xbf16, #tpu.memory_space<vmem>>, vector<16x16xbf16>
    %c0_3 = arith.constant 0 : index
    %c0_4 = arith.constant 0 : index
    %c0_5 = arith.constant 0 : index
    %c0_6 = arith.constant 0 : index
    %2 = vector.load %arg6[%c0_3, %c0_4, %c0_5, %c0_6] : memref<1x4x16x16xf32, #tpu.memory_space<vmem>>, vector<1x4x16x16xf32>
    %3 = vector.shape_cast %2 : vector<1x4x16x16xf32> to vector<4x16x16xf32>
    %4 = arith.truncf %3 : vector<4x16x16xf32> to vector<4x16x16xbf16>
    %5 = vector.shape_cast %4 : vector<4x16x16xbf16> to vector<64x16xbf16>
    %cst = arith.constant dense<0.000000e+00> : vector<64x16xf32>
    %6 = tpu.matmul %5, %1, %cst {dimension_numbers = #tpu.dot_dimension_numbers<[1], [0], [0], [1], [0, 0, 1, 1], [], []>} : vector<64x16xbf16>, vector<16x16xbf16>, vector<64x16xf32> -> vector<64x16xf32>
    %7 = arith.truncf %6 : vector<64x16xf32> to vector<64x16xbf16>
    %8 = vector.shape_cast %7 : vector<64x16xbf16> to vector<4x16x16xbf16>
    %c0_7 = arith.constant 0 : index
    %c0_8 = arith.constant 0 : index
    %c0_9 = arith.constant 0 : index
    %9 = vector.load %arg8[%c0_7, %c0_8, %c0_9] : memref<4x16x16xbf16, #tpu.memory_space<vmem>>, vector<4x16x16xbf16>
    tpu.vector_store %arg8[%c0_7, %c0_8, %c0_9], %8 {strides = array<i32>} : memref<4x16x16xbf16, #tpu.memory_space<vmem>>, vector<4x16x16xbf16>,
    %c0_10 = arith.constant 0 : index
    %c0_11 = arith.constant 0 : index
    %c0_12 = arith.constant 0 : index
    %10 = vector.load %arg1[%c0_10, %c0_11, %c0_12] : memref<1x2x2xf32, #tpu.memory_space<vmem>>, vector<1x2x2xf32>
    %11 = vector.shape_cast %10 : vector<1x2x2xf32> to vector<2x2xf32>
    %12 = arith.truncf %11 : vector<2x2xf32> to vector<2x2xbf16>
    %c0_13 = arith.constant 0 : index
    %c0_14 = arith.constant 0 : index
    %13 = vector.load %arg2[%c0_13, %c0_14] : memref<16x2xbf16, #tpu.memory_space<vmem>>, vector<16x2xbf16>
    %cst_15 = arith.constant dense<0.000000e+00> : vector<16x2xf32>
    %14 = tpu.matmul %13, %12, %cst_15 {dimension_numbers = #tpu.dot_dimension_numbers<[1], [0], [0], [1], [0, 0, 1, 1], [], []>} : vector<16x2xbf16>, vector<2x2xbf16>, vector<16x2xf32> -> vector<16x2xf32>
    %15 = arith.truncf %14 : vector<16x2xf32> to vector<16x2xbf16>
    %c0_16 = arith.constant 0 : index
    %c0_17 = arith.constant 0 : index
    %16 = vector.load %arg3[%c0_16, %c0_17] : memref<2x16xbf16, #tpu.memory_space<vmem>>, vector<2x16xbf16>
    %cst_18 = arith.constant dense<0.000000e+00> : vector<16x16xf32>
    %17 = tpu.matmul %15, %16, %cst_18 {dimension_numbers = #tpu.dot_dimension_numbers<[1], [0], [0], [1], [0, 0, 1, 1], [], []>} : vector<16x2xbf16>, vector<2x16xbf16>, vector<16x16xf32> -> vector<16x16xf32>
    %c0_i32 = arith.constant 0 : i32
    %c4_i32 = arith.constant 4 : i32
    %18 = arith.addi %c0_i32, %c4_i32 : i32
    %c1_i32 = arith.constant 1 : i32
    scf.for %arg9 = %c0_i32 to %18 step %c1_i32  : i32 {
      %19 = arith.index_cast %arg9 : i32 to index
      %c0_20 = arith.constant 0 : index
      %c0_21 = arith.constant 0 : index
      %20 = vector.load %arg8[%19, %c0_20, %c0_21] : memref<4x16x16xbf16, #tpu.memory_space<vmem>>, vector<1x16x16xbf16>
      %21 = vector.shape_cast %20 : vector<1x16x16xbf16> to vector<16x16xbf16>
      %cst_22 = arith.constant dense<0.000000e+00> : vector<16x16xf32>
      %22 = tpu.matmul %0, %21, %cst_22 {dimension_numbers = #tpu.dot_dimension_numbers<[1], [0], [0], [1], [0, 0, 1, 1], [], []>} : vector<16x16xbf16>, vector<16x16xbf16>, vector<16x16xf32> -> vector<16x16xf32>
      %23 = arith.addf %22, %17 : vector<16x16xf32>
      %cst_23 = arith.constant -1.000000e+00 : f32
      %cst_24 = arith.constant 1.000000e+00 : f32
      %24 = vector.broadcast %cst_23 : f32 to vector<16x16xf32>
      %25 = arith.maximumf %24, %23 : vector<16x16xf32>
      %26 = vector.broadcast %cst_24 : f32 to vector<16x16xf32>
      %27 = arith.minimumf %26, %25 : vector<16x16xf32>
      %c0_25 = arith.constant 0 : index
      %28 = arith.index_cast %arg9 : i32 to index
      %c0_26 = arith.constant 0 : index
      %c0_27 = arith.constant 0 : index
      %29 = vector.load %arg7[%c0_25, %28, %c0_26, %c0_27] : memref<1x4x16x16xf32, #tpu.memory_space<vmem>>, vector<1x1x16x16xf32>
      %30 = vector.shape_cast %29 : vector<1x1x16x16xf32> to vector<16x16xf32>
      %31 = vector.shape_cast %27 : vector<16x16xf32> to vector<1x1x16x16xf32>
      tpu.vector_store %arg7[%c0_25, %28, %c0_26, %c0_27], %31 {strides = array<i32>} : memref<1x4x16x16xf32, #tpu.memory_space<vmem>>, vector<1x1x16x16xf32>,
    }
    %c4_i32_19 = arith.constant 4 : i32
    return
  }
  func.func @transform_0(%arg0: i32) -> (i32, i32, i32) {
    %c0_i32 = arith.constant 0 : i32
    %c0_i32_0 = arith.constant 0 : i32
    %c0_i32_1 = arith.constant 0 : i32
    return %arg0, %c0_i32, %c0_i32_0 : i32, i32, i32
  }
  func.func @transform_1(%arg0: i32) -> (i32, i32) {
    %c0_i32 = arith.constant 0 : i32
    %c0_i32_0 = arith.constant 0 : i32
    %c0_i32_1 = arith.constant 0 : i32
    return %c0_i32, %c0_i32_0 : i32, i32
  }
  func.func @transform_2(%arg0: i32) -> (i32, i32) {
    %c0_i32 = arith.constant 0 : i32
    %c0_i32_0 = arith.constant 0 : i32
    %c0_i32_1 = arith.constant 0 : i32
    return %c0_i32, %c0_i32_0 : i32, i32
  }
  func.func @transform_3(%arg0: i32) -> (i32, i32) {
    %c0_i32 = arith.constant 0 : i32
    %c0_i32_0 = arith.constant 0 : i32
    %c0_i32_1 = arith.constant 0 : i32
    return %c0_i32, %c0_i32_0 : i32, i32
  }
  func.func @transform_4(%arg0: i32) -> (i32, i32) {
    %c0_i32 = arith.constant 0 : i32
    %c0_i32_0 = arith.constant 0 : i32
    %c0_i32_1 = arith.constant 0 : i32
    return %c0_i32, %c0_i32_0 : i32, i32
  }
  func.func @transform_5(%arg0: i32) -> (i32, i32, i32, i32) {
    %c0_i32 = arith.constant 0 : i32
    %c0_i32_0 = arith.constant 0 : i32
    %c0_i32_1 = arith.constant 0 : i32
    %c0_i32_2 = arith.constant 0 : i32
    return %arg0, %c0_i32, %c0_i32_0, %c0_i32_1 : i32, i32, i32, i32
  }
  func.func @transform_6(%arg0: i32) -> (i32, i32, i32, i32) {
    %c0_i32 = arith.constant 0 : i32
    %c0_i32_0 = arith.constant 0 : i32
    %c0_i32_1 = arith.constant 0 : i32
    %c0_i32_2 = arith.constant 0 : i32
    return %arg0, %c0_i32, %c0_i32_0, %c0_i32_1 : i32, i32, i32, i32
  }
}

</mosaic_0001>

<bundles_post_ra>
// kernel: tpu_custom_call.1
= control target key start
LH: loop header
LB: loop body
LE: loop exit
PB: predicated region body
PF: predicated region fallthrough
CT: control target
= control target key end

     0   :  { %s1403_s0 = inlined_call_operand.hbm [shape: f32[2,2,2], index: 0, kind: input, shape index: {}]   ;;  %s1404_s1 = inlined_call_operand.vmem [shape: bf16[16,2], index: 1, kind: input, shape index: {}]   ;;  %s1405_s2 = inlined_call_operand.hbm [shape: bf16[2,16], index: 2, kind: input, shape index: {}]   ;;  %s1406_s3 = inlined_call_operand.vmem [shape: bf16[16,16], index: 3, kind: input, shape index: {}]   ;;  %s1407_s4 = inlined_call_operand.vmem [shape: bf16[16,16], index: 4, kind: input, shape index: {}]   ;;  %s1408_s5 = inlined_call_operand.hbm [shape: f32[2,4,16,16], index: 5, kind: input, shape index: {}]   ;;  %s1409_s6 = inlined_call_operand.hbm [shape: f32[2,4,16,16], index: 6, kind: output, shape index: {}]  }
   0x1   :  { %1414 = sst [smem:[#allocation15_spill]] %s1403_s0 }
   0x2   :  { %1415 = sst [smem:[#allocation16_spill]] %s1408_s5 }
   0x3   :  { %11 = vsyncpa [#allocation4], 0 }
   0x4   :  { %13 = vsyncpa [#allocation4 + $0x1], 0 }
   0x5   :  { %14 = vsyncpa [#allocation7], 0 }
   0x6   :  { %15 = vsyncpa [#allocation5], 0 }
   0x7   :  { %17 = vsyncpa [#allocation5 + $0x1], 0  ;;  %s1098_s21 = smov 0   ;;  %s1100_s22 = smov 0  }
   0x8   :  { %s1102_s23 = smov 0   ;;  %s1104_s24 = smov 0  }
   0x9 LB: > { %s1119_s25 = sadd.s32 1, %s1045_s24   ;;  %s30_s26 = sadd.s32 1, %s1041_s23  ;;  %s1045_s24 = sphi %s1104_s24, %s1436_s24   ;;  %s1041_s23 = sphi %s1102_s23, %s1435_s23   ;;  %s1037_s22 = sphi %s1100_s22, %s1434_s22   ;;  %s1033_s21 = sphi %s1098_s21, %s1433_s21  }
   0xa   : > { %s27_s27 = ssub.s32 %s1045_s24, %s1119_s25  ;;  %p37_p0 = scmp.ne.s32.totalorder %s1041_s23, %s1037_s22 }
   0xb   : > { %p28_p1 = scmp.eq.s32.totalorder %s27_s27, 0  ;;  %p38_p2 = scmp.eq.s32.totalorder %s1045_s24, 0 }
   0xc   : > { %p825_p4 = scmp.lt.s32.totalorder %s1045_s24, 2  ;;  %s223_s29 = sand.u32 1, %s1045_s24  }
   0xd   : > { %s1130_s28 = scalar_select %p28_p1, %s1041_s23, %s30_s26  }
   0xe   : > { %p39_p5 = por %p38_p2, %p37_p0  ;;  %s225_s30 = sand.u32 1, %s1041_s23  }
   0xf   : > { %1416 = sst [smem:[#allocation14_spill]] %s1130_s28  ;;  %s729_s7 = sshll.u32 %s225_s30, 1 }
  0x10   : > { %s730_s8 = sshll.u32 %s1045_s24, 5  ;;  %s1417_s0 = sld [smem:[#allocation15_spill]] }
  0x11   : > { %s227_s12 = scalar_lea.vmem [#allocation3], %s729_s7  ;;  %p1143_p6 = pnand %p825_p4, %p39_p5 }
  0x12   : > { %s234_s13 = sshll.u32 %s227_s12, 4  ;;  %s1149_s15 = sshll.u32 %s225_s30, 6  ;;  %s1147_s13 = int_to_ptr.vmem [resolvable:$true] %s234_s13 }
  0x13   : > { %s1151_s16 = scalar_lea.sflag [#allocation4], %s223_s29  ;;  %p881_p8 = pneg %p1143_p6 }
  0x16   : > { %s1141_s11 = scalar_lea.hbm %s1417_s0, %s730_s8  ;;  %s884_s20 = scalar_lea.hbm %s1417_s0, 64 }
  0x17   : > { %s879_s17 = scalar_lea.hbm %s1141_s11, 32  ;;  %p885_p11 = scmp.lt.u32.totalorder %s1141_s11, %s1417_s0 }
  0x18   : > { %p880_p7 = scmp.ne.s32.totalorder %s1141_s11, %s879_s17  ;;  %p886_p12 = scmp.lt.u32.totalorder %s884_s20, %s879_s17 }
  0x19   : > { %p888_p1 = scmp.lt.u32.totalorder %s879_s17, %s1141_s11 }
  0x1a   : > { %p882_p9 = pnand %p881_p8, %p880_p7  ;;  %p887_p13 = por %p886_p12, %p885_p11 }
  0x1c   : > { %p883_p10 = pneg %p882_p9  ;;  %p889_p2 = por %p888_p1, %p887_p13 }
  0x1e   : > { %p890_p4 = pnand %p889_p2, %p883_p10 }
  0x20   : > { %893 = shalt.err (!%p890_p4)
}
  0x21   : > { %s894_s29 = scalar_lea.vmem %s1147_s13, 32  ;;  %s1051_s30 = smov [#allocation3]  }
  0x22   : > { %p895_p5 = scmp.ne.s32.totalorder %s1147_s13, %s894_s29  ;;  %s899_s7 = sshll.u32 %s1051_s30, 4  ;;  %s900_s7 = int_to_ptr.vmem [resolvable:$false] %s899_s7 }
  0x23   : > { %s901_s8 = scalar_lea.vmem %s900_s7, 64  ;;  %p902_p3 = scmp.lt.s32.totalorder %s1147_s13, %s900_s7 }
  0x24   : > { %p897_p7 = pnand %p895_p5, %p881_p8  ;;  %p903_p11 = scmp.lt.s32.totalorder %s901_s8, %s894_s29 }
  0x26   : > { %p898_p9 = pneg %p897_p7  ;;  %p904_p12 = por %p903_p11, %p902_p3 }
  0x28   : > { %p905_p13 = pnand %p904_p12, %p898_p9 }
  0x2a   : > { %908 = shalt.err (!%p905_p13)
}
  0x2b   : > { %816 = dma.hbm_to_vmem [thread:$0]  (!%p1143_p6), %s1141_s11, 32, %s1147_s13, %s1151_s16  }
  0x2c   : > { %s245_s9 = scalar_lea.vmem [#allocation8], %s1149_s15  ;;  %s1181_s12 = sadd.s32 4294967295, %s1045_s24  }
  0x2d   : > { %s252_s10 = sshll.u32 %s245_s9, 4  ;;  %s725_s17 = sadd.s32 4294967294, %s1045_s24   ;;  %s1208_s10 = int_to_ptr.vmem [resolvable:$true] %s252_s10 }
  0x2e   : > { %p43_p3 = scmp.ne.s32.totalorder %s1037_s22, %s1033_s21  ;;  %p1410_p10 = scmp.eq.s32.totalorder %s1181_s12, 0 }
  0x2f   : > { %p177_p1 = scmp.eq.s32.totalorder %s1181_s12, 1  ;;  %p183_p2 = scmp.eq.s32.totalorder %s725_s17, 1 }
  0x30   : > { %p1190_p4 = por %p1410_p10, %p43_p3  ;;  %p726_p5 = scmp.ge.s32.totalorder %s1045_s24, 1 }
  0x31   : > { %p1198_p7 = por %p177_p1, %p37_p0  ;;  %p1202_p9 = por %p183_p2, %p43_p3 }
  0x32   : > { %s1419_s18 = scalar_select %p1190_p4, 1, 0 }
  0x33   : > { %s1420_s11 = scalar_select %p1198_p7, 1, 0 }
  0x34   : > { %s1421_s13 = scalar_select %p1202_p9, 1, 0 }
  0x35   : > { %p190_p11 = scmp.lt.s32.totalorder %s1045_s24, 3  ;;  %s758_s15 = sshll.u32 %s1045_s24, 10 }
  0x36   : > { %s1052_s20 = smov [#allocation6]   ;;  %s1423_s5 = sld [smem:[#allocation16_spill]] }
  0x37   : > { %p1210_p12 = pnand %p726_p5, %p190_p11  ;;  %s206_s26 = sshll.u32 %s1052_s20, 4  ;;  %s1221_s26 = int_to_ptr.vmem [resolvable:$true] %s206_s26 }
  0x39   : > { %s1422_s19 = scalar_select %p1210_p12, 1, 0 }
  0x3a   : > { %p809_p0 = pneg %p1210_p12 }
  0x3c   : > { %s1217_s30 = scalar_lea.hbm %s1423_s5, %s758_s15  ;;  %p1225_p13 = pnand %p809_p0, %p1410_p10 }
  0x3d   : > { %s909_s8 = scalar_lea.hbm %s1217_s30, 1024  ;;  %s914_s15 = scalar_lea.hbm %s1423_s5, 2048 }
  0x3e   : > { %p910_p3 = scmp.ne.s32.totalorder %s1217_s30, %s909_s8  ;;  %p915_p5 = scmp.lt.u32.totalorder %s1217_s30, %s1423_s5 }
  0x3f   : > { %p916_p11 = scmp.lt.u32.totalorder %s914_s15, %s909_s8  ;;  %p918_p0 = scmp.lt.u32.totalorder %s909_s8, %s1217_s30 }
  0x40   : > { %p912_p1 = pnand %p910_p3, %p881_p8 }
  0x41   : > { %p917_p9 = por %p916_p11, %p915_p5 }
  0x42   : > { %p913_p2 = pneg %p912_p1 }
  0x43   : > { %p919_p10 = por %p918_p0, %p917_p9 }
  0x45   : > { %p920_p7 = pnand %p919_p10, %p913_p2 }
  0x47   : > { %923 = shalt.err (!%p920_p7)
}
  0x48   : > { %s924_s29 = scalar_lea.vmem %s1208_s10, 1024  ;;  %s1053_s9 = smov [#allocation8]  }
  0x49   : > { %p925_p3 = scmp.ne.s32.totalorder %s1208_s10, %s924_s29  ;;  %s929_s17 = sshll.u32 %s1053_s9, 4  ;;  %s930_s17 = int_to_ptr.vmem [resolvable:$false] %s929_s17 }
  0x4a   : > { %s931_s20 = scalar_lea.vmem %s930_s17, 2048  ;;  %p932_p12 = scmp.lt.s32.totalorder %s1208_s10, %s930_s17 }
  0x4b   : > { %p927_p1 = pnand %p925_p3, %p881_p8  ;;  %p933_p5 = scmp.lt.s32.totalorder %s931_s20, %s924_s29 }
  0x4d   : > { %p928_p4 = pneg %p927_p1  ;;  %p934_p11 = por %p933_p5, %p932_p12 }
  0x4f   : > { %p935_p9 = pnand %p934_p11, %p928_p4 }
  0x51   : > { %938 = shalt.err (!%p935_p9)
}
  0x52   : > { %s1054_s8 = smov 128   ;;  %s1055_s15 = smov 8  }
  0x53   : > { %819 = dma.hbm_to_vmem [thread:$0]  (!%p1143_p6), %s1217_s30, 1024, %s1208_s10, %s1151_s16, %s1054_s8, %s1054_s8, %s1055_s15  }
  0x54   : > { %s939_s9 = scalar_lea.hbm %s1405_s2, 16  ;;  %p941_p10 = pneg %p1225_p13 }
  0x55   : > { %p940_p8 = scmp.ne.s32.totalorder %s1405_s2, %s939_s9  ;;  %p946_p12 = scmp.lt.u32.totalorder %s939_s9, %s1405_s2 }
  0x57   : > { %p942_p4 = pnand %p941_p10, %p940_p8 }
  0x59   : > { %p943_p7 = pneg %p942_p4 }
  0x5b   : > { %p948_p2 = pnand %p946_p12, %p943_p7 }
  0x5d   : > { %951 = shalt.err (!%p948_p2)
}
  0x5e   : > { %s952_s0 = scalar_lea.vmem %s1221_s26, 16  ;;  %s959_s5 = scalar_lea.vmem %s1221_s26, 32 }
  0x5f   : > { %p953_p6 = scmp.ne.s32.totalorder %s1221_s26, %s952_s0  ;;  %p960_p1 = scmp.lt.s32.totalorder %s1221_s26, %s1221_s26 }
  0x60   : > { %p961_p5 = scmp.lt.s32.totalorder %s959_s5, %s952_s0 }
  0x61   : > { %p955_p0 = pnand %p953_p6, %p941_p10 }
  0x62   : > { %p962_p11 = por %p961_p5, %p960_p1 }
  0x63   : > { %p956_p3 = pneg %p955_p0 }
  0x65   : > { %p963_p9 = pnand %p962_p11, %p956_p3 }
  0x67   : > { %966 = shalt.err (!%p963_p9)
}
  0x68   : > { %812 = dma.hbm_to_vmem [thread:$0]  (!%p1225_p13), %s1405_s2, 16, %s1221_s26, [#allocation7]  }
  0x69   : > { %p1425_p8 = scmp.ne.s32.totalorder %s1422_s19, 0 }
  0x6a   : > { %s266_s16 = sand.u32 (!%p1425_p8), 1, %s1181_s12   ;;  %s1279_s10 = sand.u32 (!%p1425_p8), 1, %s1037_s22  }
  0x6b   : > { %264 = sbr.rel (%p1425_p8) target bundleno = 799 (0x31f), region = 44  ;;  %s735_s30 = sshll.u32 (!%p1425_p8), %s1279_s10, 1 }
  0x6c   : > { %s267_s20 = scalar_lea.sflag (!%p1425_p8), [#allocation4], %s266_s16  ;;  %s270_s8 = scalar_lea.vmem (!%p1425_p8), [#allocation3], %s735_s30 }
  0x6d   : > { %p1426_p10 = scmp.ne.s32.totalorder (!%p1425_p8), %s1419_s18, 0 }
  0x72   : > { %1016 = dma.done.wait (%p1426_p10), %s267_s20, 32  }
  0x73   : > { %1018 = vsyncadd (%p1426_p10), %s267_s20, 4294967264  ;;  %p1427_p13 = scmp.eq.s32.totalorder %s1181_s12, 0 }
  0x75   : > { %1020 = dma.done.wait (%p1427_p13), [#allocation7], 16   ;;  %p1428_p4 = pmov %p1427_p13 }
  0x76   : > { %s737_s19 = sshll.u32 %s1279_s10, 6 }
  0x77   : > { %1022 = vsyncadd (%p1428_p4), [#allocation7], 4294967280  ;;  %s1293_s26 = scalar_lea.vmem [#allocation8], %s737_s19 }
  0x78   : > { %1024 = dma.done.wait (%p1426_p10), %s267_s20, 1024  }
  0x79   : > { %1026 = vsyncadd (%p1426_p10), %s267_s20, 4294966272  ;;  %v1056_v0 = vmov 0.0   ;;  %vm1057_vm0 = vmmov 0   ;;  %vm439_vm1 = vcmask 1040384   ;;  %v1303_v1 = vld [vmem:[%s1406_s3] sm:$0xf] }
  0x7a   : > { %781 = vmatprep.subr.bf16.mxu1 %v1056_v0  ;;  %783 = vmatprep.mubr.msk.bf16.mxu1 %vm1057_vm0, %v1056_v0  ;;  %v1308_v2 = vld [vmem:[%s1406_s3 + $0x4] sm:$0xf]  ;;  %v426_v3 = vld [vmem:[%s270_s8] sm:$0x3]  ;;  %v323_v10 = vld [vmem:[%s1293_s26 + $0x8] sm:$0xff]  ;;  %vm340_vm2 = vcmask 130048  }
  0x7b   : > { %v427_v4 = vpack.c.bf16 %v426_v3, %v426_v3  ;;  %v485_v5 = vld [vmem:[#allocation6] sm:$0x1]  ;;  %v322_v9 = vld [vmem:[%s1293_s26] sm:$0xff]  ;;  %vm435_vm3 = vcmask 15360   ;;  %v324_v12 = vld [vmem:[%s1293_s26 + $0x10] sm:$0xff]  ;;  %s1339_s5 = scalar_lea.vmem [#allocation9], %s737_s19 }
  0x7c   : > { %v877_v6 = vld [vmem:[%s1404_s1] sm:$0xff]   ;;  %v330_v11 = vpack.c.bf16 %v323_v10, %v322_v9  ;;  %v490_v15 = vsel %vm439_vm1, %v485_v5, 0  ;;  %v327_v17 = vld [vmem:[%s1293_s26 + $0x28] sm:$0xff]  ;;  %v328_v19 = vld [vmem:[%s1293_s26 + $0x30] sm:$0xff]  ;;  %s1341_s28 = smov 0  }
  0x7d   : > { %v441_v7 = vsel %vm439_vm1, %v427_v4, 0  ;;  %v878_v8 = vld [vmem:[%s1407_s4] sm:$0xff]  }
  0x7e   : > { %782 = vmatpush3.bf16.msra.mxu1 %v441_v7  ;;  %v325_v13 = vld [vmem:[%s1293_s26 + $0x18] sm:$0xff]  ;;  %v326_v14 = vld [vmem:[%s1293_s26 + $0x20] sm:$0xff]  ;;  %771 = vmatprep.subr.bf16.mxu0 %v878_v8 }
  0x7f   : > { %v331_v16 = vpack.c.bf16 %v325_v13, %v324_v12  ;;  %787 = vmatprep.subr.bf16.mxu1 %v1056_v0  ;;  %772 = vmatpush3.bf16.msra.mxu0 %v878_v8  ;;  %v332_v18 = vpack.c.bf16 %v327_v17, %v326_v14  ;;  %v329_v20 = vld [vmem:[%s1293_s26 + $0x38] sm:$0xff] }
  0x80   : > { %773 = vmatprep.mubr.msk.bf16.mxu0 %vm340_vm2, %v330_v11  ;;  %v333_v21 = vpack.c.bf16 %v329_v20, %v328_v19 }
  0x81   : > { %784 = vmatmul.mubr.msk.bf16.vlgmr.msra.gmra.mrb[0].mxu1 %vm435_vm3, %v877_v6 }
  0x82   : > { %788 = vmatpush3.bf16.msra.mxu1 %v490_v15  ;;  %789 = vmatprep.mubr.msk.bf16.mxu1 %vm1057_vm0, %v1056_v0 }
  0x83   : > { %774 = vmatmul.mubr.msk.bf16.vlgmr.msra.gmra.mrb[0].mxu0 %vm340_vm2, %v331_v16 }
  0x84   : > { %777 = vmatprep.mubr.msk.bf16.mxu0 %vm340_vm2, %v332_v18 }
  0x8b   : > { %778 = vmatmul.mubr.msk.bf16.gmra.mrb[4].mxu0 %vm340_vm2, %v333_v21 }
 0x154   : > { %v477_v22 = vpop.f32.mrb[0].mxu1 }
 0x155   : > { %v785_v23 = vpop.f32.mrb[1].mxu1 }
 0x156   : > { %v480_v24 = vpop.f32.mrb[2].mxu1  ;;  %v775_v25 = vpop.f32.mrb[0].mxu0 }
 0x157   : > { %v484_v26 = vpack.c.bf16 %v480_v24, %v477_v22  ;;  %v786_v27 = vpop.f32.mrb[3].mxu1  ;;  %v387_v28 = vpop.f32.mrb[1].mxu0 }
 0x158   : > { %v776_v29 = vpop.f32.mrb[2].mxu0 }
 0x159   : > { %790 = vmatmul.mubr.msk.bf16.vlgmr.msra.gmra.mrb[4].mxu1 %vm435_vm3, %v484_v26  ;;  %v419_v30 = vpack.c.bf16 %v776_v29, %v775_v25  ;;  %v390_v31 = vpop.f32.mrb[3].mxu0 }
 0x15a   : > { %v418_v32 = vpack.c.bf16 %v390_v31, %v387_v28 }
 0x15b   : > { %423 = vst.msk [vmem:[#allocation2 + $0x8] sm:$0xff] %vm340_vm2, %v419_v30 }
 0x15c   : > { %422 = vst.msk [vmem:[#allocation2] sm:$0xff] %vm340_vm2, %v418_v32 }
 0x15e   : > { %v779_v33 = vpop.f32.mrb[4].mxu0 }
 0x15f   : > { %v403_v34 = vpop.f32.mrb[5].mxu0 }
 0x160   : > { %v780_v35 = vpop.f32.mrb[6].mxu0 }
 0x161   : > { %v421_v36 = vpack.c.bf16 %v780_v35, %v779_v33  ;;  %v406_v37 = vpop.f32.mrb[7].mxu0 }
 0x162   : > { %v420_v38 = vpack.c.bf16 %v406_v37, %v403_v34 }
 0x163   : > { %425 = vst.msk [vmem:[#allocation2 + $0x18] sm:$0xff] %vm340_vm2, %v421_v36 }
 0x164   : > { %424 = vst.msk [vmem:[#allocation2 + $0x10] sm:$0xff] %vm340_vm2, %v420_v38 }
 0x22c   : > { %v526_v39 = vpop.f32.mrb[4].mxu1 }
 0x22d   : > { %v791_v40 = vpop.f32.mrb[5].mxu1 }
 0x22e   : > { %v529_v41 = vpop.f32.mrb[6].mxu1 }
 0x22f   : > { %v792_v42 = vpop.f32.mrb[7].mxu1 }
 0x230 LB: >> { %v1058_v43 = vmov 0.0   ;;  %vm1059_vm4 = vmmov 0   ;;  %s747_s14 = sshll.u32 %s1049_s28, 3  ;;  %v748_v45 = vcombine.low %v1303_v1, %v1308_v2  ;;  %s752_s30 = sshll.u32 %s1049_s28, 4  ;;  %s1049_s28 = sphi %s1341_s28, %s538_s28  }
 0x231   : >> { %793 = vmatprep.subr.bf16.mxu0 %v1058_v43  ;;  %795 = vmatprep.mubr.msk.bf16.mxu0 %vm1059_vm4, %v1058_v43  ;;  %s540_s16 = scalar_lea.vmem [#allocation2], %s747_s14  ;;  %s596_s20 = scalar_lea.vmem %s1339_s5, %s752_s30 [#allocation9] }
 0x232   : >> { %v541_v44 = vld [vmem:[%s540_s16] sm:$0xff]  ;;  %s538_s28 = sadd.s32 1, %s1049_s28  }
 0x233   : >> { %794 = vmatpush3.bf16.msra.mxu0 %v541_v44  ;;  %p535_p7 = scmp.ge.s32.totalorder %s538_s28, 4  }
 0x234   : > { %s759_s8 = sshll.u32 (%p535_p7), %s1181_s12, 10  ;;  %s613_s15 = sshll.u32 (%p535_p7), %s1339_s5, 4  ;;  %s1359_s15 = int_to_ptr.vmem [resolvable:$true] %s613_s15 }
 0x235   : > { %s1356_s7 = scalar_lea.hbm (%p535_p7), %s1409_s6, %s759_s8  ;;  %s600_s27 = scalar_lea.sflag (%p535_p7), [#allocation5], %s1279_s10 }
 0x236   : >> { %796 = vmatmul.mubr.msk.bf16.vlgmr.msra.gmra.mrb[0].mxu0 %vm340_vm2, %v748_v45  ;;  %s967_s9 = scalar_lea.vmem (%p535_p7), %s1359_s15, 1024  ;;  %p1429_p2 = scmp.ne.s32.totalorder (%p535_p7), %s1420_s11, 0 }
 0x237   : > { %p968_p12 = scmp.ne.s32.totalorder (%p535_p7), %s1359_s15, %s967_s9  ;;  %s1060_s18 = smov (%p535_p7), [#allocation9]  }
 0x238   : > { %s971_s29 = sshll.u32 (%p535_p7), %s1060_s18, 4  ;;  %s972_s29 = int_to_ptr.vmem [resolvable:$false] %s971_s29 }
 0x239   : > { %p969_p6 = pnand (%p535_p7), %p968_p12, %p1429_p2  ;;  %s973_s12 = scalar_lea.vmem (%p535_p7), %s972_s29, 2048 }
 0x23a   : > { %p974_p3 = scmp.lt.s32.totalorder (%p535_p7), %s1359_s15, %s972_s29  ;;  %p975_p1 = scmp.lt.s32.totalorder (%p535_p7), %s973_s12, %s967_s9 }
 0x23b   : > { %p970_p0 = pneg (%p535_p7), %p969_p6 }
 0x23c   : > { %p976_p5 = por (%p535_p7), %p975_p1, %p974_p3 }
 0x23e   : > { %p977_p11 = pnand (%p535_p7), %p976_p5, %p970_p0 }
 0x309   : >> { %v584_v46 = vpop.f32.mrb[0].mxu0 }
 0x30a   : >> { %v585_v47 = vadd.f32 %v584_v46, %v526_v39  ;;  %v797_v48 = vpop.f32.mrb[1].mxu0  ;;  %537 = sbr.rel (!%p535_p7) target bundleno = 560 (0x230), region = 113 }
 0x30b   : >> { %v587_v49 = vpop.f32.mrb[2].mxu0 }
 0x30c   : >> { %v750_v50 = vclamps-f32 %v585_v47, 1.0  ;;  %v588_v51 = vadd.f32 %v587_v49, %v529_v41  ;;  %v798_v52 = vpop.f32.mrb[3].mxu0 }
 0x30e   : >> { %597 = vst.msk [vmem:[%s596_s20] sm:$0xff] %vm340_vm2, %v750_v50  ;;  %v751_v53 = vclamps-f32 %v588_v51, 1.0 }
 0x310   : >> { %598 = vst.msk [vmem:[%s596_s20 + $0x8] sm:$0xff] %vm340_vm2, %v751_v53 }
 0x311   : > { %980 = shalt.err (!%p977_p11)
}
 0x312   : > { %s981_s17 = scalar_lea.hbm %s1356_s7, 1024  ;;  %s985_s28 = scalar_lea.hbm %s1409_s6, 2048 }
 0x313   : > { %p982_p9 = scmp.ne.s32.totalorder %s1356_s7, %s981_s17  ;;  %p986_p13 = scmp.lt.u32.totalorder %s1356_s7, %s1409_s6 }
 0x314   : > { %p987_p4 = scmp.lt.u32.totalorder %s985_s28, %s981_s17  ;;  %p989_p12 = scmp.lt.u32.totalorder %s981_s17, %s1356_s7 }
 0x315   : > { %p983_p8 = pnand %p982_p9, %p1429_p2 }
 0x316   : > { %p988_p7 = por %p987_p4, %p986_p13 }
 0x317   : > { %p984_p10 = pneg %p983_p8 }
 0x318   : > { %p990_p6 = por %p989_p12, %p988_p7 }
 0x31a   : > { %p991_p0 = pnand %p990_p6, %p984_p10 }
 0x31c   : > { %994 = shalt.err (!%p991_p0)
}
 0x31d   : > { %s1061_s30 = smov 128   ;;  %s1062_s20 = smov 8  }
 0x31e   : > { %807 = dma.vmem_to_hbm [thread:$0]  (%p1429_p2), %s1359_s15, 1024, %s1356_s7, %s600_s27, %s1061_s30, %s1061_s30, %s1062_s20  }
 0x31f PF: > { %s628_s8 = sand.u32 1, %s1033_s21   ;;  %p1430_p3 = scmp.ne.s32.totalorder %s1421_s13, 0 }
 0x320   : > { %p1431_p1 = scmp.ge.s32.totalorder %s1045_s24, 2  ;;  %s629_s19 = scalar_lea.sflag [#allocation5], %s628_s8 }
 0x322   : > { %p821_p5 = pnand %p1431_p1, %p1430_p3 }
 0x324   : > { %1028 = dma.done.wait (!%p821_p5), %s629_s19, 1024  }
 0x325   : > { %1030 = vsyncadd (!%p821_p5), %s629_s19, 4294966272  ;;  %s1432_s26 = sld [smem:[#allocation14_spill]]  ;;  %p20_p11 = scmp.ge.s32.totalorder %s1119_s25, 4  }
 0x326   : > { %s1433_s21 = smov %s1037_s22  ;;  %s1434_s22 = smov %s1041_s23 }
 0x327   : > { %s1436_s24 = smov %s1119_s25  ;;  %22 = sbr.rel (!%p20_p11) target bundleno = 9 (0x9), region = 124 }
 0x32b   : > { %s1435_s23 = smov %s1432_s26 }
 0x32e   :  { %634 = vsyncpa [#allocation4], 1 }
 0x32f   :  { %636 = vsyncpa [#allocation4 + $0x1], 1 }
 0x330   :  { %637 = vsyncpa [#allocation7], 1 }
 0x331   :  { %638 = vsyncpa [#allocation5], 1 }
 0x332   :  { %640 = vsyncpa [#allocation5 + $0x1], 1 }

// kernel: tpu_custom_call.1
= control target key start
LH: loop header
LB: loop body
LE: loop exit
PB: predicated region body
PF: predicated region fallthrough
CT: control target
= control target key end

     0   :  { %s1403_s0 = inlined_call_operand.hbm [shape: f32[2,2,2], index: 0, kind: input, shape index: {}]   ;;  %s1404_s1 = inlined_call_operand.vmem [shape: bf16[16,2], index: 1, kind: input, shape index: {}]   ;;  %s1405_s2 = inlined_call_operand.hbm [shape: bf16[2,16], index: 2, kind: input, shape index: {}]   ;;  %s1406_s3 = inlined_call_operand.vmem [shape: bf16[16,16], index: 3, kind: input, shape index: {}]   ;;  %s1407_s4 = inlined_call_operand.vmem [shape: bf16[16,16], index: 4, kind: input, shape index: {}]   ;;  %s1408_s5 = inlined_call_operand.hbm [shape: f32[2,4,16,16], index: 5, kind: input, shape index: {}]   ;;  %s1409_s6 = inlined_call_operand.hbm [shape: f32[2,4,16,16], index: 6, kind: output, shape index: {}]  }
   0x1   :  { %1414 = sst [smem:[#allocation15_spill]] %s1403_s0 }
   0x2   :  { %1415 = sst [smem:[#allocation16_spill]] %s1408_s5 }
   0x3   :  { %11 = vsyncpa [#allocation4], 0 }
   0x4   :  { %13 = vsyncpa [#allocation4 + $0x1], 0 }
   0x5   :  { %14 = vsyncpa [#allocation7], 0 }
   0x6   :  { %15 = vsyncpa [#allocation5], 0 }
   0x7   :  { %17 = vsyncpa [#allocation5 + $0x1], 0  ;;  %s1098_s21 = smov 0   ;;  %s1100_s22 = smov 0  }
   0x8   :  { %s1102_s23 = smov 0   ;;  %s1104_s24 = smov 0  }
   0x9 LB: > { %s1119_s25 = sadd.s32 1, %s1045_s24   ;;  %s30_s26 = sadd.s32 1, %s1041_s23  ;;  %s1045_s24 = sphi %s1104_s24, %s1436_s24   ;;  %s1041_s23 = sphi %s1102_s23, %s1435_s23   ;;  %s1037_s22 = sphi %s1100_s22, %s1434_s22   ;;  %s1033_s21 = sphi %s1098_s21, %s1433_s21  }
   0xa   : > { %s27_s27 = ssub.s32 %s1045_s24, %s1119_s25  ;;  %p37_p0 = scmp.ne.s32.totalorder %s1041_s23, %s1037_s22 }
   0xb   : > { %p28_p1 = scmp.eq.s32.totalorder %s27_s27, 0  ;;  %p38_p2 = scmp.eq.s32.totalorder %s1045_s24, 0 }
   0xc   : > { %p825_p4 = scmp.lt.s32.totalorder %s1045_s24, 2  ;;  %s223_s29 = sand.u32 1, %s1045_s24  }
   0xd   : > { %s1130_s28 = scalar_select %p28_p1, %s1041_s23, %s30_s26  }
   0xe   : > { %p39_p5 = por %p38_p2, %p37_p0  ;;  %s225_s30 = sand.u32 1, %s1041_s23  }
   0xf   : > { %1416 = sst [smem:[#allocation14_spill]] %s1130_s28  ;;  %s729_s7 = sshll.u32 %s225_s30, 1 }
  0x10   : > { %s730_s8 = sshll.u32 %s1045_s24, 5  ;;  %s1417_s0 = sld [smem:[#allocation15_spill]] }
  0x11   : > { %s227_s12 = scalar_lea.vmem [#allocation3], %s729_s7  ;;  %p1143_p6 = pnand %p825_p4, %p39_p5 }
  0x12   : > { %s234_s13 = sshll.u32 %s227_s12, 4  ;;  %s1149_s15 = sshll.u32 %s225_s30, 6  ;;  %s1147_s13 = int_to_ptr.vmem [resolvable:$true] %s234_s13 }
  0x13   : > { %s1151_s16 = scalar_lea.sflag [#allocation4], %s223_s29  ;;  %p881_p8 = pneg %p1143_p6 }
  0x16   : > { %s1141_s11 = scalar_lea.hbm %s1417_s0, %s730_s8  ;;  %s884_s20 = scalar_lea.hbm %s1417_s0, 64 }
  0x17   : > { %s879_s17 = scalar_lea.hbm %s1141_s11, 32  ;;  %p885_p11 = scmp.lt.u32.totalorder %s1141_s11, %s1417_s0 }
  0x18   : > { %p880_p7 = scmp.ne.s32.totalorder %s1141_s11, %s879_s17  ;;  %p886_p12 = scmp.lt.u32.totalorder %s884_s20, %s879_s17 }
  0x19   : > { %p888_p1 = scmp.lt.u32.totalorder %s879_s17, %s1141_s11 }
  0x1a   : > { %p882_p9 = pnand %p881_p8, %p880_p7  ;;  %p887_p13 = por %p886_p12, %p885_p11 }
  0x1c   : > { %p883_p10 = pneg %p882_p9  ;;  %p889_p2 = por %p888_p1, %p887_p13 }
  0x1e   : > { %p890_p4 = pnand %p889_p2, %p883_p10 }
  0x20   : > { %893 = shalt.err (!%p890_p4)
}
  0x21   : > { %s894_s29 = scalar_lea.vmem %s1147_s13, 32  ;;  %s1051_s30 = smov [#allocation3]  }
  0x22   : > { %p895_p5 = scmp.ne.s32.totalorder %s1147_s13, %s894_s29  ;;  %s899_s7 = sshll.u32 %s1051_s30, 4  ;;  %s900_s7 = int_to_ptr.vmem [resolvable:$false] %s899_s7 }
  0x23   : > { %s901_s8 = scalar_lea.vmem %s900_s7, 64  ;;  %p902_p3 = scmp.lt.s32.totalorder %s1147_s13, %s900_s7 }
  0x24   : > { %p897_p7 = pnand %p895_p5, %p881_p8  ;;  %p903_p11 = scmp.lt.s32.totalorder %s901_s8, %s894_s29 }
  0x26   : > { %p898_p9 = pneg %p897_p7  ;;  %p904_p12 = por %p903_p11, %p902_p3 }
  0x28   : > { %p905_p13 = pnand %p904_p12, %p898_p9 }
  0x2a   : > { %908 = shalt.err (!%p905_p13)
}
  0x2b   : > { %816 = dma.hbm_to_vmem [thread:$0]  (!%p1143_p6), %s1141_s11, 32, %s1147_s13, %s1151_s16  }
  0x2c   : > { %s245_s9 = scalar_lea.vmem [#allocation8], %s1149_s15  ;;  %s1181_s12 = sadd.s32 4294967295, %s1045_s24  }
  0x2d   : > { %s252_s10 = sshll.u32 %s245_s9, 4  ;;  %s725_s17 = sadd.s32 4294967294, %s1045_s24   ;;  %s1208_s10 = int_to_ptr.vmem [resolvable:$true] %s252_s10 }
  0x2e   : > { %p43_p3 = scmp.ne.s32.totalorder %s1037_s22, %s1033_s21  ;;  %p1410_p10 = scmp.eq.s32.totalorder %s1181_s12, 0 }
  0x2f   : > { %p177_p1 = scmp.eq.s32.totalorder %s1181_s12, 1  ;;  %p183_p2 = scmp.eq.s32.totalorder %s725_s17, 1 }
  0x30   : > { %p1190_p4 = por %p1410_p10, %p43_p3  ;;  %p726_p5 = scmp.ge.s32.totalorder %s1045_s24, 1 }
  0x31   : > { %p1198_p7 = por %p177_p1, %p37_p0  ;;  %p1202_p9 = por %p183_p2, %p43_p3 }
  0x32   : > { %s1419_s18 = scalar_select %p1190_p4, 1, 0 }
  0x33   : > { %s1420_s11 = scalar_select %p1198_p7, 1, 0 }
  0x34   : > { %s1421_s13 = scalar_select %p1202_p9, 1, 0 }
  0x35   : > { %p190_p11 = scmp.lt.s32.totalorder %s1045_s24, 3  ;;  %s758_s15 = sshll.u32 %s1045_s24, 10 }
  0x36   : > { %s1052_s20 = smov [#allocation6]   ;;  %s1423_s5 = sld [smem:[#allocation16_spill]] }
  0x37   : > { %p1210_p12 = pnand %p726_p5, %p190_p11  ;;  %s206_s26 = sshll.u32 %s1052_s20, 4  ;;  %s1221_s26 = int_to_ptr.vmem [resolvable:$true] %s206_s26 }
  0x39   : > { %s1422_s19 = scalar_select %p1210_p12, 1, 0 }
  0x3a   : > { %p809_p0 = pneg %p1210_p12 }
  0x3c   : > { %s1217_s30 = scalar_lea.hbm %s1423_s5, %s758_s15  ;;  %p1225_p13 = pnand %p809_p0, %p1410_p10 }
  0x3d   : > { %s909_s8 = scalar_lea.hbm %s1217_s30, 1024  ;;  %s914_s15 = scalar_lea.hbm %s1423_s5, 2048 }
  0x3e   : > { %p910_p3 = scmp.ne.s32.totalorder %s1217_s30, %s909_s8  ;;  %p915_p5 = scmp.lt.u32.totalorder %s1217_s30, %s1423_s5 }
  0x3f   : > { %p916_p11 = scmp.lt.u32.totalorder %s914_s15, %s909_s8  ;;  %p918_p0 = scmp.lt.u32.totalorder %s909_s8, %s1217_s30 }
  0x40   : > { %p912_p1 = pnand %p910_p3, %p881_p8 }
  0x41   : > { %p917_p9 = por %p916_p11, %p915_p5 }
  0x42   : > { %p913_p2 = pneg %p912_p1 }
  0x43   : > { %p919_p10 = por %p918_p0, %p917_p9 }
  0x45   : > { %p920_p7 = pnand %p919_p10, %p913_p2 }
  0x47   : > { %923 = shalt.err (!%p920_p7)
}
  0x48   : > { %s924_s29 = scalar_lea.vmem %s1208_s10, 1024  ;;  %s1053_s9 = smov [#allocation8]  }
  0x49   : > { %p925_p3 = scmp.ne.s32.totalorder %s1208_s10, %s924_s29  ;;  %s929_s17 = sshll.u32 %s1053_s9, 4  ;;  %s930_s17 = int_to_ptr.vmem [resolvable:$false] %s929_s17 }
  0x4a   : > { %s931_s20 = scalar_lea.vmem %s930_s17, 2048  ;;  %p932_p12 = scmp.lt.s32.totalorder %s1208_s10, %s930_s17 }
  0x4b   : > { %p927_p1 = pnand %p925_p3, %p881_p8  ;;  %p933_p5 = scmp.lt.s32.totalorder %s931_s20, %s924_s29 }
  0x4d   : > { %p928_p4 = pneg %p927_p1  ;;  %p934_p11 = por %p933_p5, %p932_p12 }
  0x4f   : > { %p935_p9 = pnand %p934_p11, %p928_p4 }
  0x51   : > { %938 = shalt.err (!%p935_p9)
}
  0x52   : > { %s1054_s8 = smov 128   ;;  %s1055_s15 = smov 8  }
  0x53   : > { %819 = dma.hbm_to_vmem [thread:$0]  (!%p1143_p6), %s1217_s30, 1024, %s1208_s10, %s1151_s16, %s1054_s8, %s1054_s8, %s1055_s15  }
  0x54   : > { %s939_s9 = scalar_lea.hbm %s1405_s2, 16  ;;  %p941_p10 = pneg %p1225_p13 }
  0x55   : > { %p940_p8 = scmp.ne.s32.totalorder %s1405_s2, %s939_s9  ;;  %p946_p12 = scmp.lt.u32.totalorder %s939_s9, %s1405_s2 }
  0x57   : > { %p942_p4 = pnand %p941_p10, %p940_p8 }
  0x59   : > { %p943_p7 = pneg %p942_p4 }
  0x5b   : > { %p948_p2 = pnand %p946_p12, %p943_p7 }
  0x5d   : > { %951 = shalt.err (!%p948_p2)
}
  0x5e   : > { %s952_s0 = scalar_lea.vmem %s1221_s26, 16  ;;  %s959_s5 = scalar_lea.vmem %s1221_s26, 32 }
  0x5f   : > { %p953_p6 = scmp.ne.s32.totalorder %s1221_s26, %s952_s0  ;;  %p960_p1 = scmp.lt.s32.totalorder %s1221_s26, %s1221_s26 }
  0x60   : > { %p961_p5 = scmp.lt.s32.totalorder %s959_s5, %s952_s0 }
  0x61   : > { %p955_p0 = pnand %p953_p6, %p941_p10 }
  0x62   : > { %p962_p11 = por %p961_p5, %p960_p1 }
  0x63   : > { %p956_p3 = pneg %p955_p0 }
  0x65   : > { %p963_p9 = pnand %p962_p11, %p956_p3 }
  0x67   : > { %966 = shalt.err (!%p963_p9)
}
  0x68   : > { %812 = dma.hbm_to_vmem [thread:$0]  (!%p1225_p13), %s1405_s2, 16, %s1221_s26, [#allocation7]  }
  0x69   : > { %p1425_p8 = scmp.ne.s32.totalorder %s1422_s19, 0 }
  0x6a   : > { %s266_s16 = sand.u32 (!%p1425_p8), 1, %s1181_s12   ;;  %s1279_s10 = sand.u32 (!%p1425_p8), 1, %s1037_s22  }
  0x6b   : > { %264 = sbr.rel (%p1425_p8) target bundleno = 799 (0x31f), region = 44  ;;  %s735_s30 = sshll.u32 (!%p1425_p8), %s1279_s10, 1 }
  0x6c   : > { %s267_s20 = scalar_lea.sflag (!%p1425_p8), [#allocation4], %s266_s16  ;;  %s270_s8 = scalar_lea.vmem (!%p1425_p8), [#allocation3], %s735_s30 }
  0x6d   : > { %p1426_p10 = scmp.ne.s32.totalorder (!%p1425_p8), %s1419_s18, 0 }
  0x72   : > { %1016 = dma.done.wait (%p1426_p10), %s267_s20, 32  }
  0x73   : > { %1018 = vsyncadd (%p1426_p10), %s267_s20, 4294967264  ;;  %p1427_p13 = scmp.eq.s32.totalorder %s1181_s12, 0 }
  0x75   : > { %1020 = dma.done.wait (%p1427_p13), [#allocation7], 16   ;;  %p1428_p4 = pmov %p1427_p13 }
  0x76   : > { %s737_s19 = sshll.u32 %s1279_s10, 6 }
  0x77   : > { %1022 = vsyncadd (%p1428_p4), [#allocation7], 4294967280  ;;  %s1293_s26 = scalar_lea.vmem [#allocation8], %s737_s19 }
  0x78   : > { %1024 = dma.done.wait (%p1426_p10), %s267_s20, 1024  }
  0x79   : > { %1026 = vsyncadd (%p1426_p10), %s267_s20, 4294966272  ;;  %v1056_v0 = vmov 0.0   ;;  %vm1057_vm0 = vmmov 0   ;;  %vm439_vm1 = vcmask 1040384   ;;  %v1303_v1 = vld [vmem:[%s1406_s3] sm:$0xf] }
  0x7a   : > { %781 = vmatprep.subr.bf16.mxu1 %v1056_v0  ;;  %783 = vmatprep.mubr.msk.bf16.mxu1 %vm1057_vm0, %v1056_v0  ;;  %v1308_v2 = vld [vmem:[%s1406_s3 + $0x4] sm:$0xf]  ;;  %v426_v3 = vld [vmem:[%s270_s8] sm:$0x3]  ;;  %v323_v10 = vld [vmem:[%s1293_s26 + $0x8] sm:$0xff]  ;;  %vm340_vm2 = vcmask 130048  }
  0x7b   : > { %v427_v4 = vpack.c.bf16 %v426_v3, %v426_v3  ;;  %v485_v5 = vld [vmem:[#allocation6] sm:$0x1]  ;;  %v322_v9 = vld [vmem:[%s1293_s26] sm:$0xff]  ;;  %vm435_vm3 = vcmask 15360   ;;  %v324_v12 = vld [vmem:[%s1293_s26 + $0x10] sm:$0xff]  ;;  %s1339_s5 = scalar_lea.vmem [#allocation9], %s737_s19 }
  0x7c   : > { %v877_v6 = vld [vmem:[%s1404_s1] sm:$0xff]   ;;  %v330_v11 = vpack.c.bf16 %v323_v10, %v322_v9  ;;  %v490_v15 = vsel %vm439_vm1, %v485_v5, 0  ;;  %v327_v17 = vld [vmem:[%s1293_s26 + $0x28] sm:$0xff]  ;;  %v328_v19 = vld [vmem:[%s1293_s26 + $0x30] sm:$0xff]  ;;  %s1341_s28 = smov 0  }
  0x7d   : > { %v441_v7 = vsel %vm439_vm1, %v427_v4, 0  ;;  %v878_v8 = vld [vmem:[%s1407_s4] sm:$0xff]  }
  0x7e   : > { %782 = vmatpush3.bf16.msra.mxu1 %v441_v7  ;;  %v325_v13 = vld [vmem:[%s1293_s26 + $0x18] sm:$0xff]  ;;  %v326_v14 = vld [vmem:[%s1293_s26 + $0x20] sm:$0xff]  ;;  %771 = vmatprep.subr.bf16.mxu0 %v878_v8 }
  0x7f   : > { %v331_v16 = vpack.c.bf16 %v325_v13, %v324_v12  ;;  %787 = vmatprep.subr.bf16.mxu1 %v1056_v0  ;;  %772 = vmatpush3.bf16.msra.mxu0 %v878_v8  ;;  %v332_v18 = vpack.c.bf16 %v327_v17, %v326_v14  ;;  %v329_v20 = vld [vmem:[%s1293_s26 + $0x38] sm:$0xff] }
  0x80   : > { %773 = vmatprep.mubr.msk.bf16.mxu0 %vm340_vm2, %v330_v11  ;;  %v333_v21 = vpack.c.bf16 %v329_v20, %v328_v19 }
  0x81   : > { %784 = vmatmul.mubr.msk.bf16.vlgmr.msra.gmra.mrb[0].mxu1 %vm435_vm3, %v877_v6 }
  0x82   : > { %788 = vmatpush3.bf16.msra.mxu1 %v490_v15  ;;  %789 = vmatprep.mubr.msk.bf16.mxu1 %vm1057_vm0, %v1056_v0 }
  0x83   : > { %774 = vmatmul.mubr.msk.bf16.vlgmr.msra.gmra.mrb[0].mxu0 %vm340_vm2, %v331_v16 }
  0x84   : > { %777 = vmatprep.mubr.msk.bf16.mxu0 %vm340_vm2, %v332_v18 }
  0x8b   : > { %778 = vmatmul.mubr.msk.bf16.gmra.mrb[4].mxu0 %vm340_vm2, %v333_v21 }
 0x154   : > { %v477_v22 = vpop.f32.mrb[0].mxu1 }
 0x155   : > { %v785_v23 = vpop.f32.mrb[1].mxu1 }
 0x156   : > { %v480_v24 = vpop.f32.mrb[2].mxu1  ;;  %v775_v25 = vpop.f32.mrb[0].mxu0 }
 0x157   : > { %v484_v26 = vpack.c.bf16 %v480_v24, %v477_v22  ;;  %v786_v27 = vpop.f32.mrb[3].mxu1  ;;  %v387_v28 = vpop.f32.mrb[1].mxu0 }
 0x158   : > { %v776_v29 = vpop.f32.mrb[2].mxu0 }
 0x159   : > { %790 = vmatmul.mubr.msk.bf16.vlgmr.msra.gmra.mrb[4].mxu1 %vm435_vm3, %v484_v26  ;;  %v419_v30 = vpack.c.bf16 %v776_v29, %v775_v25  ;;  %v390_v31 = vpop.f32.mrb[3].mxu0 }
 0x15a   : > { %v418_v32 = vpack.c.bf16 %v390_v31, %v387_v28 }
 0x15b   : > { %423 = vst.msk [vmem:[#allocation2 + $0x8] sm:$0xff] %vm340_vm2, %v419_v30 }
 0x15c   : > { %422 = vst.msk [vmem:[#allocation2] sm:$0xff] %vm340_vm2, %v418_v32 }
 0x15e   : > { %v779_v33 = vpop.f32.mrb[4].mxu0 }
 0x15f   : > { %v403_v34 = vpop.f32.mrb[5].mxu0 }
 0x160   : > { %v780_v35 = vpop.f32.mrb[6].mxu0 }
 0x161   : > { %v421_v36 = vpack.c.bf16 %v780_v35, %v779_v33  ;;  %v406_v37 = vpop.f32.mrb[7].mxu0 }
 0x162   : > { %v420_v38 = vpack.c.bf16 %v406_v37, %v403_v34 }
 0x163   : > { %425 = vst.msk [vmem:[#allocation2 + $0x18] sm:$0xff] %vm340_vm2, %v421_v36 }
 0x164   : > { %424 = vst.msk [vmem:[#allocation2 + $0x10] sm:$0xff] %vm340_vm2, %v420_v38 }
 0x22c   : > { %v526_v39 = vpop.f32.mrb[4].mxu1 }
 0x22d   : > { %v791_v40 = vpop.f32.mrb[5].mxu1 }
 0x22e   : > { %v529_v41 = vpop.f32.mrb[6].mxu1 }
 0x22f   : > { %v792_v42 = vpop.f32.mrb[7].mxu1 }
 0x230 LB: >> { %v1058_v43 = vmov 0.0   ;;  %vm1059_vm4 = vmmov 0   ;;  %s747_s14 = sshll.u32 %s1049_s28, 3  ;;  %v748_v45 = vcombine.low %v1303_v1, %v1308_v2  ;;  %s752_s30 = sshll.u32 %s1049_s28, 4  ;;  %s1049_s28 = sphi %s1341_s28, %s538_s28  }
 0x231   : >> { %793 = vmatprep.subr.bf16.mxu0 %v1058_v43  ;;  %795 = vmatprep.mubr.msk.bf16.mxu0 %vm1059_vm4, %v1058_v43  ;;  %s540_s16 = scalar_lea.vmem [#allocation2], %s747_s14  ;;  %s596_s20 = scalar_lea.vmem %s1339_s5, %s752_s30 [#allocation9] }
 0x232   : >> { %v541_v44 = vld [vmem:[%s540_s16] sm:$0xff]  ;;  %s538_s28 = sadd.s32 1, %s1049_s28  }
 0x233   : >> { %794 = vmatpush3.bf16.msra.mxu0 %v541_v44  ;;  %p535_p7 = scmp.ge.s32.totalorder %s538_s28, 4  }
 0x234   : > { %s759_s8 = sshll.u32 (%p535_p7), %s1181_s12, 10  ;;  %s613_s15 = sshll.u32 (%p535_p7), %s1339_s5, 4  ;;  %s1359_s15 = int_to_ptr.vmem [resolvable:$true] %s613_s15 }
 0x235   : > { %s1356_s7 = scalar_lea.hbm (%p535_p7), %s1409_s6, %s759_s8  ;;  %s600_s27 = scalar_lea.sflag (%p535_p7), [#allocation5], %s1279_s10 }
 0x236   : >> { %796 = vmatmul.mubr.msk.bf16.vlgmr.msra.gmra.mrb[0].mxu0 %vm340_vm2, %v748_v45  ;;  %s967_s9 = scalar_lea.vmem (%p535_p7), %s1359_s15, 1024  ;;  %p1429_p2 = scmp.ne.s32.totalorder (%p535_p7), %s1420_s11, 0 }
 0x237   : > { %p968_p12 = scmp.ne.s32.totalorder (%p535_p7), %s1359_s15, %s967_s9  ;;  %s1060_s18 = smov (%p535_p7), [#allocation9]  }
 0x238   : > { %s971_s29 = sshll.u32 (%p535_p7), %s1060_s18, 4  ;;  %s972_s29 = int_to_ptr.vmem [resolvable:$false] %s971_s29 }
 0x239   : > { %p969_p6 = pnand (%p535_p7), %p968_p12, %p1429_p2  ;;  %s973_s12 = scalar_lea.vmem (%p535_p7), %s972_s29, 2048 }
 0x23a   : > { %p974_p3 = scmp.lt.s32.totalorder (%p535_p7), %s1359_s15, %s972_s29  ;;  %p975_p1 = scmp.lt.s32.totalorder (%p535_p7), %s973_s12, %s967_s9 }
 0x23b   : > { %p970_p0 = pneg (%p535_p7), %p969_p6 }
 0x23c   : > { %p976_p5 = por (%p535_p7), %p975_p1, %p974_p3 }
 0x23e   : > { %p977_p11 = pnand (%p535_p7), %p976_p5, %p970_p0 }
 0x309   : >> { %v584_v46 = vpop.f32.mrb[0].mxu0 }
 0x30a   : >> { %v585_v47 = vadd.f32 %v584_v46, %v526_v39  ;;  %v797_v48 = vpop.f32.mrb[1].mxu0  ;;  %537 = sbr.rel (!%p535_p7) target bundleno = 560 (0x230), region = 113 }
 0x30b   : >> { %v587_v49 = vpop.f32.mrb[2].mxu0 }
 0x30c   : >> { %v750_v50 = vclamps-f32 %v585_v47, 1.0  ;;  %v588_v51 = vadd.f32 %v587_v49, %v529_v41  ;;  %v798_v52 = vpop.f32.mrb[3].mxu0 }
 0x30e   : >> { %597 = vst.msk [vmem:[%s596_s20] sm:$0xff] %vm340_vm2, %v750_v50  ;;  %v751_v53 = vclamps-f32 %v588_v51, 1.0 }
 0x310   : >> { %598 = vst.msk [vmem:[%s596_s20 + $0x8] sm:$0xff] %vm340_vm2, %v751_v53 }
 0x311   : > { %980 = shalt.err (!%p977_p11)
}
 0x312   : > { %s981_s17 = scalar_lea.hbm %s1356_s7, 1024  ;;  %s985_s28 = scalar_lea.hbm %s1409_s6, 2048 }
 0x313   : > { %p982_p9 = scmp.ne.s32.totalorder %s1356_s7, %s981_s17  ;;  %p986_p13 = scmp.lt.u32.totalorder %s1356_s7, %s1409_s6 }
 0x314   : > { %p987_p4 = scmp.lt.u32.totalorder %s985_s28, %s981_s17  ;;  %p989_p12 = scmp.lt.u32.totalorder %s981_s17, %s1356_s7 }
 0x315   : > { %p983_p8 = pnand %p982_p9, %p1429_p2 }
 0x316   : > { %p988_p7 = por %p987_p4, %p986_p13 }
 0x317   : > { %p984_p10 = pneg %p983_p8 }
 0x318   : > { %p990_p6 = por %p989_p12, %p988_p7 }
 0x31a   : > { %p991_p0 = pnand %p990_p6, %p984_p10 }
 0x31c   : > { %994 = shalt.err (!%p991_p0)
}
 0x31d   : > { %s1061_s30 = smov 128   ;;  %s1062_s20 = smov 8  }
 0x31e   : > { %807 = dma.vmem_to_hbm [thread:$0]  (%p1429_p2), %s1359_s15, 1024, %s1356_s7, %s600_s27, %s1061_s30, %s1061_s30, %s1062_s20  }
 0x31f PF: > { %s628_s8 = sand.u32 1, %s1033_s21   ;;  %p1430_p3 = scmp.ne.s32.totalorder %s1421_s13, 0 }
 0x320   : > { %p1431_p1 = scmp.ge.s32.totalorder %s1045_s24, 2  ;;  %s629_s19 = scalar_lea.sflag [#allocation5], %s628_s8 }
 0x322   : > { %p821_p5 = pnand %p1431_p1, %p1430_p3 }
 0x324   : > { %1028 = dma.done.wait (!%p821_p5), %s629_s19, 1024  }
 0x325   : > { %1030 = vsyncadd (!%p821_p5), %s629_s19, 4294966272  ;;  %s1432_s26 = sld [smem:[#allocation14_spill]]  ;;  %p20_p11 = scmp.ge.s32.totalorder %s1119_s25, 4  }
 0x326   : > { %s1433_s21 = smov %s1037_s22  ;;  %s1434_s22 = smov %s1041_s23 }
 0x327   : > { %s1436_s24 = smov %s1119_s25  ;;  %22 = sbr.rel (!%p20_p11) target bundleno = 9 (0x9), region = 124 }
 0x32b   : > { %s1435_s23 = smov %s1432_s26 }
 0x32e   :  { %634 = vsyncpa [#allocation4], 1 }
 0x32f   :  { %636 = vsyncpa [#allocation4 + $0x1], 1 }
 0x330   :  { %637 = vsyncpa [#allocation7], 1 }
 0x331   :  { %638 = vsyncpa [#allocation5], 1 }
 0x332   :  { %640 = vsyncpa [#allocation5 + $0x1], 1 }

</bundles_post_ra>
